<compile_context>
chip_gen: v5e
topology: v5e:2x2
jax: 0.10.0
libtpu: 0.0.40
codegen_flags: <defaults>
</compile_context>

<pallas_src>
import jax
import jax.numpy as jnp
from jax.experimental import pallas as pl
from jax.experimental.pallas import tpu as pltpu


def conv3x3_kernel(xp_ref, w_ref, b_ref, o_ref):
    # xp_ref: (1, TH+2, W+2, Cin)   halo'd input tile (one batch x H-tile)
    # w_ref : (9*Cin, Cout_pad)     3x3 taps folded into the contraction dim
    # b_ref : (1, Cout_pad)         f32 bias (lane-dense)
    # o_ref : (1, TH, W, Cout_pad)
    TH = o_ref.shape[1]
    W = o_ref.shape[2]
    Cpad = o_ref.shape[3]
    Cin = xp_ref.shape[3]

    x0 = xp_ref[0]                                  # (TH+2, W+2, Cin), one load

    # im2col once per tile: build the (TH*W, 9*Cin) patch, then a single MXU
    # matmul with K = 9*Cin (instead of nine K=Cin matmuls).
    cols = []
    for dy in range(3):
        for dx in range(3):
            cols.append(x0[dy:dy + TH, dx:dx + W, :])   # (TH, W, Cin)
    patch = jnp.concatenate(cols, axis=-1).reshape(TH * W, 9 * Cin)

    acc = jnp.dot(patch.astype(w_ref.dtype), w_ref[...],
                  preferred_element_type=jnp.float32)   # (TH*W, Cout_pad) f32
    acc = acc + b_ref[...]                              # bias added once, f32
    # For much larger TH*W a VMEM scratch accumulator would be used; at these
    # tile sizes the (TH*W, 128) f32 accumulator fits comfortably.
    o_ref[0] = acc.reshape(TH, W, Cpad).astype(o_ref.dtype)


def _choose_tile_h(H, row_in_bytes, row_out_bytes, budget_bytes):
    """Largest divisor TH of H whose double-buffered in+out tiles fit the VMEM
    budget, preferring >= 2 H-tiles so (batch x H-tiles) has enough parallel
    grid units for both v7x TensorCores."""
    best = 1
    for th in range(1, H + 1):
        if H % th:
            continue
        tile_bytes = 2 * ((th + 2) * row_in_bytes + th * row_out_bytes)
        if tile_bytes > budget_bytes:
            continue
        if H // th >= 2 or best == 1:
            best = th
    return best


def conv3x3_nhwc(x, weight, bias, use_refl=True, compute_dtype=None,
                 vmem_tile_budget_bytes=12 << 20):
    """x: (N, H, W, Cin); weight: (Cout, Cin, 3, 3); bias: (Cout,).
    Returns (N, H, W, Cout)."""
    N, H, W, Cin = x.shape
    Cout = weight.shape[0]
    out_dtype = x.dtype
    cdt = jnp.dtype(compute_dtype) if compute_dtype is not None else jnp.dtype(x.dtype)

    # Lane-dense Cout: pad weights / bias to a multiple of 128 lanes.
    Cpad = ((Cout + 127) // 128) * 128
    # (Cout, Cin, 3, 3) -> (dy, dx, cin, cout) -> (9*Cin, Cout) -> pad lanes.
    w = jnp.transpose(weight, (2, 3, 1, 0)).reshape(9 * Cin, Cout)
    w = jnp.pad(w, ((0, 0), (0, Cpad - Cout))).astype(cdt)
    b = jnp.pad(bias.astype(jnp.float32), (0, Cpad - Cout)).reshape(1, Cpad)

    # Reflection / zero pad H and W by 1 (matches nn.ReflectionPad2d / ZeroPad2d).
    mode = "reflect" if use_refl else "constant"
    xp = jnp.pad(x, ((0, 0), (1, 1), (1, 1), (0, 0)), mode=mode).astype(cdt)

    # Pick the H tile from a per-generation-safe VMEM budget, then pre-tile
    # rows with a 1-row halo (overlapping windows can't be expressed with
    # Blocked index maps; duplication is only 2/TH of the input bytes).
    row_in_bytes = (W + 2) * Cin * cdt.itemsize
    row_out_bytes = W * Cpad * jnp.dtype(out_dtype).itemsize
    TH = _choose_tile_h(H, row_in_bytes, row_out_bytes, vmem_tile_budget_bytes)
    nH = H // TH
    xp_tiles = jnp.stack(
        [xp[:, t * TH:t * TH + TH + 2] for t in range(nH)], axis=1
    ).reshape(N * nH, TH + 2, W + 2, Cin)

    needed = (2 * ((TH + 2) * row_in_bytes + TH * row_out_bytes)
              + w.size * cdt.itemsize + Cpad * 4 + (4 << 20))
    vmem_limit = int(min(48 << 20, max(32 << 20, needed)))

    out = pl.pallas_call(
        conv3x3_kernel,
        out_shape=jax.ShapeDtypeStruct((N, H, W, Cpad), out_dtype),
        grid_spec=pltpu.PrefetchScalarGridSpec(
            num_scalar_prefetch=0,
            grid=(N, nH),
            in_specs=[
                pl.BlockSpec((1, TH + 2, W + 2, Cin),
                             lambda n, t: (n * nH + t, 0, 0, 0)),
                pl.BlockSpec((9 * Cin, Cpad), lambda n, t: (0, 0)),
                pl.BlockSpec((1, Cpad), lambda n, t: (0, 0)),
            ],
            out_specs=pl.BlockSpec((1, TH, W, Cpad),
                                   lambda n, t: (n, t, 0, 0)),
        ),
        compiler_params=pltpu.CompilerParams(
            dimension_semantics=("parallel", "parallel"),
            vmem_limit_bytes=vmem_limit),
    )(xp_tiles, w, b)

    return out[..., :Cout]


def conv3x3(x_nchw, weight, bias, use_refl=True, compute_dtype=None):
    """NCHW public interface matching the PyTorch module.  The two transposes
    are layout glue for the NCHW contract; NHWC pipelines should call
    conv3x3_nhwc directly and skip them."""
    x = jnp.transpose(x_nchw, (0, 2, 3, 1))
    out = conv3x3_nhwc(x, weight, bias, use_refl=use_refl,
                       compute_dtype=compute_dtype)
    return jnp.transpose(out, (0, 3, 1, 2))


def conv3x3_reference(x_nchw, weight, bias, use_refl=True):
    mode = "reflect" if use_refl else "constant"
    xp = jnp.pad(x_nchw, ((0, 0), (0, 0), (1, 1), (1, 1)), mode=mode)
    out = jax.lax.conv_general_dilated(
        xp, weight, window_strides=(1, 1), padding="VALID",
        dimension_numbers=("NCHW", "OIHW", "NCHW"))
    return out + bias[None, :, None, None]


if __name__ == "__main__":
    key = jax.random.PRNGKey(0)
    k_x, k_w, k_b = jax.random.split(key, 3)

    N, Cin, H, W = 2, 4, 16, 16
    Cout = 8

    x = jax.random.normal(k_x, (N, Cin, H, W), dtype=jnp.float32)
    # Deterministic synthetic parameters (same shapes as nn.Conv2d(Cin, Cout, 3))
    weight = 0.1 * jax.random.normal(k_w, (Cout, Cin, 3, 3), dtype=jnp.float32)
    bias = 0.1 * jax.random.normal(k_b, (Cout,), dtype=jnp.float32)

    out = conv3x3(x, weight, bias, use_refl=True)
    out = jax.block_until_ready(out)

    ref = conv3x3_reference(x, weight, bias, use_refl=True)
    assert out.shape == (N, Cout, H, W)
    assert jnp.allclose(out, ref, atol=2e-4, rtol=2e-4)

    print("KERNEL_OK")
</pallas_src>

<mosaic_0001>
module attributes {stable_mosaic.version = 11 : i64} {
  func.func @conv3x3_kernel(%arg0: i32, %arg1: i32, %arg2: memref<1x10x18x4xf32, #tpu.memory_space<vmem>>, %arg3: memref<36x128xf32, #tpu.memory_space<vmem>>, %arg4: memref<1x128xf32, #tpu.memory_space<vmem>>, %arg5: memref<1x8x16x128xf32, #tpu.memory_space<vmem>>) attributes {dimension_semantics = [#tpu.dimension_semantics<parallel>, #tpu.dimension_semantics<parallel>], iteration_bounds = array<i64: 2, 2>, scalar_prefetch = 0 : i64, scratch_operands = 0 : i64, tpu.core_type = #tpu.core_type<tc>, window_params = [{transform_indices = @transform_0, window_bounds = array<i64: 1, 10, 18, 4>}, {pipeline_mode = #tpu.pipeline_mode<synchronous>, transform_indices = @transform_1, window_bounds = array<i64: 36, 128>}, {pipeline_mode = #tpu.pipeline_mode<synchronous>, transform_indices = @transform_2, window_bounds = array<i64: 1, 128>}, {transform_indices = @transform_3, window_bounds = array<i64: 1, 8, 16, 128>}]} {
    %c0 = arith.constant 0 : index
    %c0_0 = arith.constant 0 : index
    %c0_1 = arith.constant 0 : index
    %c0_2 = arith.constant 0 : index
    %0 = vector.load %arg2[%c0, %c0_0, %c0_1, %c0_2] : memref<1x10x18x4xf32, #tpu.memory_space<vmem>>, vector<1x10x18x4xf32>
    %1 = vector.shape_cast %0 : vector<1x10x18x4xf32> to vector<10x18x4xf32>
    %2 = vector.extract_strided_slice %1 {offsets = [0, 0, 0], sizes = [8, 16, 4], strides = [1, 1, 1]} : vector<10x18x4xf32> to vector<8x16x4xf32>
    %3 = vector.extract_strided_slice %1 {offsets = [0, 1, 0], sizes = [8, 16, 4], strides = [1, 1, 1]} : vector<10x18x4xf32> to vector<8x16x4xf32>
    %4 = vector.extract_strided_slice %1 {offsets = [0, 2, 0], sizes = [8, 16, 4], strides = [1, 1, 1]} : vector<10x18x4xf32> to vector<8x16x4xf32>
    %5 = vector.extract_strided_slice %1 {offsets = [1, 0, 0], sizes = [8, 16, 4], strides = [1, 1, 1]} : vector<10x18x4xf32> to vector<8x16x4xf32>
    %6 = vector.extract_strided_slice %1 {offsets = [1, 1, 0], sizes = [8, 16, 4], strides = [1, 1, 1]} : vector<10x18x4xf32> to vector<8x16x4xf32>
    %7 = vector.extract_strided_slice %1 {offsets = [1, 2, 0], sizes = [8, 16, 4], strides = [1, 1, 1]} : vector<10x18x4xf32> to vector<8x16x4xf32>
    %8 = vector.extract_strided_slice %1 {offsets = [2, 0, 0], sizes = [8, 16, 4], strides = [1, 1, 1]} : vector<10x18x4xf32> to vector<8x16x4xf32>
    %9 = vector.extract_strided_slice %1 {offsets = [2, 1, 0], sizes = [8, 16, 4], strides = [1, 1, 1]} : vector<10x18x4xf32> to vector<8x16x4xf32>
    %10 = vector.extract_strided_slice %1 {offsets = [2, 2, 0], sizes = [8, 16, 4], strides = [1, 1, 1]} : vector<10x18x4xf32> to vector<8x16x4xf32>
    %11 = tpu.concatenate %2, %3, %4, %5, %6, %7, %8, %9, %10 in 2 : vector<8x16x4xf32>, vector<8x16x4xf32>, vector<8x16x4xf32>, vector<8x16x4xf32>, vector<8x16x4xf32>, vector<8x16x4xf32>, vector<8x16x4xf32>, vector<8x16x4xf32>, vector<8x16x4xf32> -> vector<8x16x36xf32>
    %12 = vector.shape_cast %11 : vector<8x16x36xf32> to vector<128x36xf32>
    %c0_3 = arith.constant 0 : index
    %c0_4 = arith.constant 0 : index
    %13 = vector.load %arg3[%c0_3, %c0_4] : memref<36x128xf32, #tpu.memory_space<vmem>>, vector<36x128xf32>
    %cst = arith.constant dense<0.000000e+00> : vector<128x128xf32>
    %14 = tpu.matmul %12, %13, %cst {dimension_numbers = #tpu.dot_dimension_numbers<[1], [0], [0], [1], [0, 0, 1, 1], [], []>} : vector<128x36xf32>, vector<36x128xf32>, vector<128x128xf32> -> vector<128x128xf32>
    %c0_5 = arith.constant 0 : index
    %c0_6 = arith.constant 0 : index
    %15 = vector.load %arg4[%c0_5, %c0_6] : memref<1x128xf32, #tpu.memory_space<vmem>>, vector<1x128xf32>
    %16 = vector.broadcast %15 : vector<1x128xf32> to vector<128x128xf32>
    %17 = arith.addf %14, %16 : vector<128x128xf32>
    %18 = vector.shape_cast %17 : vector<128x128xf32> to vector<8x16x128xf32>
    %c0_7 = arith.constant 0 : index
    %c0_8 = arith.constant 0 : index
    %c0_9 = arith.constant 0 : index
    %c0_10 = arith.constant 0 : index
    %19 = vector.load %arg5[%c0_7, %c0_8, %c0_9, %c0_10] : memref<1x8x16x128xf32, #tpu.memory_space<vmem>>, vector<1x8x16x128xf32>
    %20 = vector.shape_cast %19 : vector<1x8x16x128xf32> to vector<8x16x128xf32>
    %21 = vector.shape_cast %18 : vector<8x16x128xf32> to vector<1x8x16x128xf32>
    tpu.vector_store %arg5[%c0_7, %c0_8, %c0_9, %c0_10], %21 {strides = array<i32>} : memref<1x8x16x128xf32, #tpu.memory_space<vmem>>, vector<1x8x16x128xf32>,
    return
  }
  func.func @transform_0(%arg0: i32, %arg1: i32) -> (i32, i32, i32, i32) {
    %c2_i32 = arith.constant 2 : i32
    %0 = arith.muli %arg0, %c2_i32 : i32
    %1 = arith.addi %0, %arg1 : i32
    %c0_i32 = arith.constant 0 : i32
    %c0_i32_0 = arith.constant 0 : i32
    %c0_i32_1 = arith.constant 0 : i32
    %c0_i32_2 = arith.constant 0 : i32
    return %1, %c0_i32, %c0_i32_0, %c0_i32_1 : i32, i32, i32, i32
  }
  func.func @transform_1(%arg0: i32, %arg1: i32) -> (i32, i32) {
    %c0_i32 = arith.constant 0 : i32
    %c0_i32_0 = arith.constant 0 : i32
    %c0_i32_1 = arith.constant 0 : i32
    return %c0_i32, %c0_i32_0 : i32, i32
  }
  func.func @transform_2(%arg0: i32, %arg1: i32) -> (i32, i32) {
    %c0_i32 = arith.constant 0 : i32
    %c0_i32_0 = arith.constant 0 : i32
    %c0_i32_1 = arith.constant 0 : i32
    return %c0_i32, %c0_i32_0 : i32, i32
  }
  func.func @transform_3(%arg0: i32, %arg1: i32) -> (i32, i32, i32, i32) {
    %c0_i32 = arith.constant 0 : i32
    %c0_i32_0 = arith.constant 0 : i32
    %c0_i32_1 = arith.constant 0 : i32
    return %arg0, %arg1, %c0_i32, %c0_i32_0 : i32, i32, i32, i32
  }
}

</mosaic_0001>

<bundles_post_ra>
// kernel: tpu_custom_call.1
= control target key start
LH: loop header
LB: loop body
LE: loop exit
PB: predicated region body
PF: predicated region fallthrough
CT: control target
= control target key end

     0   :  { %8 = vsyncpa [#allocation3], 0  ;;  %s2313_s0 = inlined_call_operand.vmem [shape: f32[4,10,18,4], index: 0, kind: input, shape index: {}]   ;;  %s2314_s1 = inlined_call_operand.vmem [shape: f32[36,128], index: 1, kind: input, shape index: {}]   ;;  %s2315_s2 = inlined_call_operand.vmem [shape: f32[1,128], index: 2, kind: input, shape index: {}]   ;;  %s2316_s3 = inlined_call_operand.hbm [shape: f32[2,16,16,128], index: 3, kind: output, shape index: {}]  }
   0x1   :  { %10 = vsyncpa [#allocation3 + $0x1], 0  ;;  %s1375_s12 = smov 0   ;;  %s1377_s13 = smov 0  }
   0x2   :  { %s1379_s14 = smov 0   ;;  %s1381_s15 = smov 0  }
   0x3   :  { %s1383_s16 = smov 0   ;;  %s1385_s17 = smov 0  }
   0x4   :  { %s1387_s18 = smov 0   ;;  %s1389_s19 = smov 0  }
   0x5 LB: > { %s1118_s20 = sadd.s32 4294967295, %s1344_s19   ;;  %s1119_s21 = sadd.s32 4294967294, %s1344_s19   ;;  %s1344_s19 = sphi %s1389_s19, %s16_s19   ;;  %s1340_s18 = sphi %s1387_s18, %s2334_s18   ;;  %s1336_s17 = sphi %s1385_s17, %s2333_s17   ;;  %s1332_s16 = sphi %s1383_s16, %s2332_s16   ;;  %s1328_s15 = sphi %s1381_s15, %s2331_s15   ;;  %s1324_s14 = sphi %s1379_s14, %s2330_s14   ;;  %s1320_s13 = sphi %s1377_s13, %s2329_s13   ;;  %s1316_s12 = sphi %s1375_s12, %s2328_s12  }
   0x6   : > { %s25_s22 = sadd.s32 1, %s1336_s17  ;;  %s28_s23 = sadd.s32 1, %s1340_s18 }
   0x7   : > { %p26_p0 = scmp.ge.s32.totalorder %s25_s22, 2  ;;  %p119_p1 = scmp.ne.s32.totalorder %s1324_s14, %s1320_s13 }
   0x8   : > { %p120_p2 = scmp.eq.s32.totalorder %s1118_s20, 3  ;;  %p125_p5 = scmp.ne.s32.totalorder %s1320_s13, %s1316_s12 }
   0x9   : > { %s2336_s22 = smov (%p26_p0, %s25_s22), 0  ;;  %s2338_s23 = smov (!%p26_p0, %s28_s23), %s1340_s18 }
   0xa   : > { %s105_s24 = ssub.s32 %s1336_s17, %s2336_s22  ;;  %p1426_p3 = por %p120_p2, %p119_p1 }
   0xb   : > { %p30_p4 = scmp.ge.s32.totalorder %s2338_s23, 2  ;;  %p126_p6 = scmp.eq.s32.totalorder %s1119_s21, 3 }
   0xc   : > { %p1124_p7 = scmp.ge.s32.totalorder %s1344_s19, 1  ;;  %p162_p9 = scmp.lt.s32.totalorder %s1344_s19, 5 }
   0xd   : > { %s2340_s23 = smov (%p30_p4, %s2338_s23), 0  ;;  %p1435_p8 = por %p126_p6, %p125_p5 }
   0xe   : > { %s104_s27 = ssub.s32 %s1340_s18, %s2340_s23  ;;  %s109_s28 = sadd.s32 1, %s1324_s14 }
   0xf   : > { %s106_s29 = sor.u32 %s105_s24, %s104_s27  ;;  %p163_p10 = pnand %p1124_p7, %p162_p9 }
  0x10   : > { %p107_p11 = scmp.eq.s32.totalorder %s106_s29, 0 }
  0x11   : > { %166 = sbr.rel (%p163_p10) target bundleno = 620 (0x26c), region = 32 }
  0x12   : > { %s1444_s30 = scalar_select %p107_p11, %s1324_s14, %s109_s28  }
  0x16   : > { %s1126_s4 = sshll.u32 %s1332_s16, 1  ;;  %vm252_vm0 = vcmask 1046528   ;;  %s1346_s10 = smov 4   ;;  %vm341_vm1 = vcmask 1045504   ;;  %vm761_vm2 = vcmask 64512   ;;  %vm744_vm3 = vcmask 31744  }
  0x17   : > { %s189_s5 = sadd.s32 %s1328_s15, %s1126_s4  ;;  %s1347_s11 = smov 8   ;;  %vm778_vm4 = vcmask 97280   ;;  %vm795_vm5 = vcmask 130048   ;;  %vm938_vm6 = vcmask 1043456   ;;  %vm812_vm7 = vcmask 162816  }
  0x18   : > { %p190_p12 = scmp.lt.s32.totalorder %s189_s5, 3  ;;  %s1348_s20 = smov 12   ;;  %vm829_vm8 = vcmask 195584   ;;  %vm846_vm9 = vcmask 228352   ;;  %vm863_vm10 = vcmask 261120   ;;  %vm889_vm11 = vcmask 293888  }
  0x19   : > { %s1349_s21 = smov 16   ;;  %s1350_s24 = smov 20  }
  0x1a   : > { %s2342_s5 = smov (!%p190_p12, %s189_s5), 3  ;;  %s1351_s27 = smov 28  }
  0x1b   : > { %s1168_s6 = smul.u32 240, %s2342_s5  ;;  %s1352_s28 = smov 24  }
  0x1c   : > { %s1353_s29 = smov 32   ;;  %s1148_s7 = sshll.u32 %s1332_s16, 5 }
  0x1d   : > { %s1451_s9 = scalar_lea.vmem %s2313_s0, %s1168_s6 }
  0x1e   : > { %v1454_v0 = vld [vmem:[%s1451_s9 + $0x30] sm:$0xff]  ;;  %v1457_v1 = vld [vmem:[%s1451_s9 + $0x38] sm:$0xff]  ;;  %v1465_v5 = vld [vmem:[%s1451_s9 + $0x20] sm:$0xff] }
  0x1f   : > { %v1460_v2 = vld [vmem:[%s1451_s9 + $0x18] sm:$0xff]  ;;  %v263_v3 = vrot.slane %v1454_v0, 1  ;;  %v264_v4 = vrot.slane %v1457_v1, 1  ;;  %v1469_v7 = vld [vmem:[%s1451_s9] sm:$0xff]  ;;  %v1472_v8 = vld [vmem:[%s1451_s9 + $0x8] sm:$0xff]  ;;  %v259_v9 = vrot.slane %v1465_v5, 1 }
  0x20   : > { %v258_v6 = vrot.slane %v1460_v2, 1  ;;  %v253_v10 = vrot.slane %v1469_v7, 1  ;;  %v254_v11 = vrot.slane %v1472_v8, 1  ;;  %v1478_v12 = vld [vmem:[%s1451_s9 + $0x40] sm:$0x3]  ;;  %v1512_v25 = vld [vmem:[%s1451_s9 + $0x68] sm:$0xff] }
  0x21   : > { %v1481_v13 = vsel %vm252_vm0, %v263_v3, %v264_v4  ;;  %v1484_v14 = vld [vmem:[%s1451_s9 + $0x28] sm:$0x3]  ;;  %v1487_v15 = vld [vmem:[%s1451_s9 + $0x10] sm:$0x3]  ;;  %v266_v18 = vrot.slane %v1478_v12, 1  ;;  %v1509_v24 = vld [vmem:[%s1451_s9 + $0x60] sm:$0xff] }
  0x22   : > { %301 = vrot.lane.b32.xlu2 %v1481_v13, %s1346_s10  ;;  %v1492_v16 = vsel %vm252_vm0, %v258_v6, %v259_v9  ;;  %v255_v17 = vsel %vm252_vm0, %v253_v10, %v254_v11  ;;  %v261_v19 = vrot.slane %v1484_v14, 1  ;;  %v256_v20 = vrot.slane %v1487_v15, 1  ;;  %v1515_v26 = vld [vmem:[%s1451_s9 + $0x50] sm:$0xff]  ;;  %v1518_v27 = vld [vmem:[%s1451_s9 + $0x58] sm:$0x3]  ;;  %v1521_v28 = vld [vmem:[%s1451_s9 + $0x48] sm:$0xff] }
  0x23   : > { %297 = vrot.lane.b32.xlu1 %v1492_v16, %s1346_s10  ;;  %293 = vrot.lane.b32.xlu0 %v255_v17, %s1346_s10  ;;  %v1502_v21 = vsel %vm252_vm0, %v264_v4, %v266_v18  ;;  %2322 = vst [vmem:[#allocation5_spill] sm:$0xff] %v1515_v26  ;;  %v273_v29 = vrot.slane %v1509_v24, 1  ;;  %v274_v30 = vrot.slane %v1512_v25, 1  ;;  %v269_v31 = vrot.slane %v1515_v26, 1  ;;  %v1543_v37 = vld [vmem:[%s1451_s9 + $0x80] sm:$0xff]  ;;  %v1549_v39 = vld [vmem:[%s1451_s9 + $0x78] sm:$0xff] }
  0x24   : > { %v1505_v22 = vsel %vm252_vm0, %v259_v9, %v261_v19  ;;  %v257_v23 = vsel %vm252_vm0, %v254_v11, %v256_v20  ;;  %v271_v32 = vrot.slane %v1518_v27, 1  ;;  %v268_v33 = vrot.slane %v1521_v28, 1  ;;  %v1546_v38 = vld [vmem:[%s1451_s9 + $0x88] sm:$0x3]  ;;  %v1552_v40 = vld [vmem:[%s1451_s9 + $0x70] sm:$0x3] }
  0x25   : > { %v1534_v34 = vsel %vm252_vm0, %v273_v29, %v274_v30  ;;  %v279_v41 = vrot.slane %v1543_v37, 1  ;;  %v281_v42 = vrot.slane %v1546_v38, 1  ;;  %v278_v43 = vrot.slane %v1549_v39, 1  ;;  %v1574_v48 = vld [vmem:[%s1451_s9 + $0xa8] sm:$0xff]  ;;  %v1577_v49 = vld [vmem:[%s1451_s9 + $0xb0] sm:$0xff]  ;;  %v1580_v50 = vld [vmem:[%s1451_s9 + $0x98] sm:$0xff] }
  0x26   : > { %v1537_v35 = vsel %vm252_vm0, %v269_v31, %v271_v32  ;;  %v1540_v36 = vsel %vm252_vm0, %v268_v33, %v269_v31  ;;  %v276_v44 = vrot.slane %v1552_v40, 1  ;;  %v1583_v51 = vld [vmem:[%s1451_s9 + $0xa0] sm:$0x3]  ;;  %v1586_v52 = vld [vmem:[%s1451_s9 + $0x90] sm:$0xff]  ;;  %v288_v53 = vrot.slane %v1574_v48, 1 }
  0x27   : > { %2323 = vst [vmem:[#allocation6_spill] sm:$0xff] %v1537_v35  ;;  %v1565_v45 = vsel %vm252_vm0, %v279_v41, %v281_v42  ;;  %v1568_v46 = vsel %vm252_vm0, %v278_v43, %v279_v41  ;;  %v289_v54 = vrot.slane %v1577_v49, 1  ;;  %v284_v55 = vrot.slane %v1580_v50, 1  ;;  %v1609_v61 = vld [vmem:[%s1451_s9 + $0xb8] sm:$0x3] }
  0x28   : > { %2324 = vst [vmem:[#allocation7_spill] sm:$0xff] %v1565_v45  ;;  %v1571_v47 = vsel %vm252_vm0, %v274_v30, %v276_v44  ;;  %v286_v56 = vrot.slane %v1583_v51, 1  ;;  %v283_v57 = vrot.slane %v1586_v52, 1  ;;  %v343_v62 = vrot.slane %v1472_v8, 2 }
  0x29   : > { %v1600_v58 = vsel %vm252_vm0, %v288_v53, %v289_v54  ;;  %v345_v63 = vrot.slane %v1487_v15, 2  ;;  %v342_v3 = vrot.slane %v1469_v7, 2  ;;  %v291_v4 = vrot.slane %v1609_v61, 1 }
  0x2a   : > { %303 = vrot.lane.b32.xlu2 %v1502_v21, %s1346_s10  ;;  %v1603_v59 = vsel %vm252_vm0, %v284_v55, %v286_v56  ;;  %v1606_v60 = vsel %vm252_vm0, %v283_v57, %v284_v55  ;;  %v352_v11 = vrot.slane %v1454_v0, 2  ;;  %v353_v15 = vrot.slane %v1457_v1, 2 }
  0x2b   : > { %299 = vrot.lane.b32.xlu1 %v1505_v22, %s1346_s10  ;;  %295 = vrot.lane.b32.xlu0 %v257_v23, %s1346_s10  ;;  %v346_v6 = vsel %vm341_vm1, %v343_v62, %v345_v63  ;;  %v344_v9 = vsel %vm341_vm1, %v342_v3, %v343_v62  ;;  %v1624_v10 = vsel %vm252_vm0, %v289_v54, %v291_v4  ;;  %v348_v17 = vrot.slane %v1465_v5, 2 }
  0x2c   : > { %v350_v18 = vrot.slane %v1484_v14, 2  ;;  %v347_v19 = vrot.slane %v1460_v2, 2  ;;  %v1636_v20 = vsel %vm341_vm1, %v352_v11, %v353_v15  ;;  %v358_v14 = vrot.slane %v1515_v26, 2 }
  0x2d   : > { %v360_v30 = vrot.slane %v1518_v27, 2  ;;  %v357_v31 = vrot.slane %v1521_v28, 2  ;;  %v355_v32 = vrot.slane %v1478_v12, 2  ;;  %v367_v12 = vrot.slane %v1549_v39, 2 }
  0x2e   : > { %v1639_v23 = vsel %vm341_vm1, %v348_v17, %v350_v18  ;;  %v1642_v29 = vsel %vm341_vm1, %v347_v19, %v348_v17  ;;  %v368_v27 = vrot.slane %v1543_v37, 2  ;;  %v363_v43 = vrot.slane %v1512_v25, 2 }
  0x2f   : > { %v1655_v33 = vsel %vm341_vm1, %v358_v14, %v360_v30  ;;  %v1658_v41 = vsel %vm341_vm1, %v357_v31, %v358_v14  ;;  %v1661_v42 = vsel %vm341_vm1, %v353_v15, %v355_v32  ;;  %v365_v44 = vrot.slane %v1552_v40, 2  ;;  %v1741_v31 = vld [vmem:[%s1451_s9 + $0xc8] sm:$0xff]  ;;  %v1744_v32 = vld [vmem:[%s1451_s9 + $0xc0] sm:$0xff] }
  0x30   : > { %v362_v53 = vrot.slane %v1509_v24, 2  ;;  %v1675_v54 = vsel %vm341_vm1, %v367_v12, %v368_v27  ;;  %v373_v40 = vrot.slane %v1580_v50, 2  ;;  %v375_v57 = vrot.slane %v1583_v51, 2 }
  0x31   : > { %v1678_v55 = vsel %vm341_vm1, %v363_v43, %v365_v44  ;;  %v372_v62 = vrot.slane %v1586_v52, 2  ;;  %v370_v63 = vrot.slane %v1546_v38, 2  ;;  %v378_v38 = vrot.slane %v1577_v49, 2 }
  0x32   : > { %309 = vrot.lane.b32.xlu2 %v1534_v34, %s1346_s10  ;;  %v1681_v56 = vsel %vm341_vm1, %v362_v53, %v363_v43  ;;  %v1694_v3 = vsel %vm341_vm1, %v373_v40, %v375_v57  ;;  %v380_v51 = vrot.slane %v1609_v61, 2 }
  0x33   : > { %307 = vrot.lane.b32.xlu1 %v1537_v35, %s1346_s10  ;;  %305 = vrot.lane.b32.xlu0 %v1540_v36, %s1346_s10  ;;  %v1697_v4 = vsel %vm341_vm1, %v372_v62, %v373_v40 }
  0x34   : > { %v1712_v11 = vsel %vm341_vm1, %v378_v38, %v380_v51 }
  0x3a   : > { %315 = vrot.lane.b32.xlu2 %v1565_v45, %s1346_s10 }
  0x3b   : > { %313 = vrot.lane.b32.xlu1 %v1568_v46, %s1346_s10  ;;  %311 = vrot.lane.b32.xlu0 %v1571_v47, %s1346_s10 }
  0x42   : > { %321 = vrot.lane.b32.xlu2 %v1600_v58, %s1346_s10 }
  0x43   : > { %319 = vrot.lane.b32.xlu1 %v1603_v59, %s1346_s10  ;;  %317 = vrot.lane.b32.xlu0 %v1606_v60, %s1346_s10 }
  0x4a   : > { %384 = vrot.lane.b32.xlu2 %v346_v6, %s1347_s11  ;;  %v1700_v6 = vsel %vm341_vm1, %v368_v27, %v370_v63 }
  0x4b   : > { %382 = vrot.lane.b32.xlu1 %v344_v9, %s1347_s11  ;;  %323 = vrot.lane.b32.xlu0 %v1624_v10, %s1346_s10  ;;  %v377_v9 = vrot.slane %v1574_v48, 2 }
  0x4d   : > { %v1715_v15 = vsel %vm341_vm1, %v377_v9, %v378_v38 }
  0x52   : > { %390 = vrot.lane.b32.xlu2 %v1636_v20, %s1347_s11 }
  0x53   : > { %388 = vrot.lane.b32.xlu1 %v1639_v23, %s1347_s11  ;;  %386 = vrot.lane.b32.xlu0 %v1642_v29, %s1347_s11 }
  0x5a   : > { %396 = vrot.lane.b32.xlu2 %v1655_v33, %s1347_s11 }
  0x5b   : > { %394 = vrot.lane.b32.xlu1 %v1658_v41, %s1347_s11  ;;  %392 = vrot.lane.b32.xlu0 %v1661_v42, %s1347_s11 }
  0x62   : > { %402 = vrot.lane.b32.xlu2 %v1675_v54, %s1347_s11 }
  0x63   : > { %400 = vrot.lane.b32.xlu1 %v1678_v55, %s1347_s11  ;;  %398 = vrot.lane.b32.xlu0 %v1681_v56, %s1347_s11 }
  0x6a   : > { %408 = vrot.lane.b32.xlu2 %v1694_v3, %s1347_s11 }
  0x6b   : > { %406 = vrot.lane.b32.xlu1 %v1697_v4, %s1347_s11  ;;  %404 = vrot.lane.b32.xlu0 %v1700_v6, %s1347_s11 }
  0x72   : > { %432 = vrot.lane.b32.xlu2 %v1460_v2, %s1348_s20 }
  0x73   : > { %412 = vrot.lane.b32.xlu1 %v1712_v11, %s1347_s11  ;;  %410 = vrot.lane.b32.xlu0 %v1715_v15, %s1347_s11 }
  0x7a   : > { %438 = vrot.lane.b32.xlu2 %v1457_v1, %s1348_s20 }
  0x7b   : > { %436 = vrot.lane.b32.xlu1 %v1454_v0, %s1348_s20  ;;  %434 = vrot.lane.b32.xlu0 %v1465_v5, %s1348_s20 }
  0x7c   : > { %v302_v61 = vpop.permute.xlu2 %301 }
  0x82   : > { %444 = vrot.lane.b32.xlu2 %v1509_v24, %s1348_s20 }
  0x83   : > { %442 = vrot.lane.b32.xlu1 %v1515_v26, %s1348_s20  ;;  %440 = vrot.lane.b32.xlu0 %v1521_v28, %s1348_s20 }
  0x84   : > { %v1728_v17 = vpop.permute.xlu2 %303 }
  0x8a   : > { %450 = vrot.lane.b32.xlu2 %v1543_v37, %s1348_s20 }
  0x8b   : > { %448 = vrot.lane.b32.xlu1 %v1549_v39, %s1348_s20  ;;  %446 = vrot.lane.b32.xlu0 %v1512_v25, %s1348_s20 }
  0x8c   : > { %v1733_v18 = vpop.permute.xlu2 %309 }
  0x92   : > { %456 = vrot.lane.b32.xlu2 %v1574_v48, %s1348_s20 }
  0x93   : > { %454 = vrot.lane.b32.xlu1 %v1580_v50, %s1348_s20  ;;  %452 = vrot.lane.b32.xlu0 %v1586_v52, %s1348_s20 }
  0x94   : > { %v1738_v19 = vpop.permute.xlu2 %315 }
  0x95   : > { %v298_v14 = vpop.permute.xlu1 %297  ;;  %v294_v30 = vpop.permute.xlu0 %293 }
  0x9a   : > { %462 = vrot.lane.b32.xlu2 %v1741_v31, %s1348_s20 }
  0x9b   : > { %460 = vrot.lane.b32.xlu1 %v1744_v32, %s1348_s20  ;;  %458 = vrot.lane.b32.xlu0 %v1577_v49, %s1348_s20 }
  0x9c   : > { %v1749_v12 = vpop.permute.xlu2 %321 }
  0x9d   : > { %v300_v27 = vpop.permute.xlu1 %299  ;;  %v296_v43 = vpop.permute.xlu0 %295 }
  0x9e   : > { %v746_v44 = vsel %vm744_vm3, %v1472_v8, %v296_v43 }
  0xa2   : > { %490 = vrot.lane.b32.xlu2 %v1481_v13, %s1349_s21 }
  0xa3   : > { %488 = vrot.lane.b32.xlu1 %v1505_v22, %s1349_s21  ;;  %486 = vrot.lane.b32.xlu0 %v1492_v16, %s1349_s21  ;;  %v749_v16 = vsel %vm744_vm3, %v1454_v0, %v302_v61 }
  0xa4   : > { %v385_v53 = vpop.permute.xlu2 %384 }
  0xa5   : > { %v308_v40 = vpop.permute.xlu1 %307  ;;  %v1760_v57 = vsel %vm761_vm2, %v746_v44, %v385_v53  ;;  %v306_v62 = vpop.permute.xlu0 %305 }
  0xa6   : > { %v752_v51 = vsel %vm744_vm3, %v1515_v26, %v308_v40  ;;  %v745_v40 = vsel %vm744_vm3, %v1469_v7, %v294_v30 }
  0xaa   : > { %496 = vrot.lane.b32.xlu2 %v1537_v35, %s1349_s21 }
  0xab   : > { %494 = vrot.lane.b32.xlu1 %v1540_v36, %s1349_s21  ;;  %492 = vrot.lane.b32.xlu0 %v1502_v21, %s1349_s21 }
  0xac   : > { %v391_v22 = vpop.permute.xlu2 %390 }
  0xad   : > { %v314_v8 = vpop.permute.xlu1 %313  ;;  %v1771_v63 = vsel %vm761_vm2, %v749_v16, %v391_v22  ;;  %v312_v38 = vpop.permute.xlu0 %311 }
  0xae   : > { %v755_v53 = vsel %vm744_vm3, %v1549_v39, %v314_v8  ;;  %v747_v8 = vsel %vm744_vm3, %v1460_v2, %v298_v14  ;;  %v534_v2 = vrot.slane %v1744_v32, 2 }
  0xb2   : > { %502 = vrot.lane.b32.xlu2 %v1568_v46, %s1349_s21 }
  0xb3   : > { %500 = vrot.lane.b32.xlu1 %v1571_v47, %s1349_s21  ;;  %498 = vrot.lane.b32.xlu0 %v1534_v34, %s1349_s21 }
  0xb4   : > { %v397_v9 = vpop.permute.xlu2 %396 }
  0xb5   : > { %v320_v61 = vpop.permute.xlu1 %319  ;;  %v1782_v43 = vsel %vm761_vm2, %v752_v51, %v397_v9  ;;  %v318_v44 = vpop.permute.xlu0 %317 }
  0xb6   : > { %v758_v7 = vsel %vm744_vm3, %v1580_v50, %v320_v61  ;;  %v482_v61 = vrot.slane %v1741_v31, 1 }
  0xba   : > { %508 = vrot.lane.b32.xlu2 %v1603_v59, %s1349_s21 }
  0xbb   : > { %506 = vrot.lane.b32.xlu1 %v1606_v60, %s1349_s21  ;;  %504 = vrot.lane.b32.xlu0 %v1565_v45, %s1349_s21 }
  0xbc   : > { %v403_v16 = vpop.permute.xlu2 %402 }
  0xbd   : > { %v1795_v22 = vsel %vm761_vm2, %v755_v53, %v403_v16  ;;  %v383_v51 = vpop.permute.xlu1 %382  ;;  %v1797_v9 = vpop.permute.xlu0 %323  ;;  %v748_v53 = vsel %vm744_vm3, %v1465_v5, %v300_v27  ;;  %v535_v5 = vrot.slane %v1741_v31, 2  ;;  %v481_v27 = vrot.slane %v1744_v32, 1 }
  0xbe   : > { %v762_v35 = vsel %vm761_vm2, %v745_v40, %v383_v51 }
  0xc2   : > { %563 = vrot.lane.b32.xlu2 %v1715_v15, %s1350_s24 }
  0xc3   : > { %555 = vrot.lane.b32.xlu1 %v1675_v54, %s1350_s24  ;;  %510 = vrot.lane.b32.xlu0 %v1600_v58, %s1349_s21 }
  0xc4   : > { %v409_v30 = vpop.permute.xlu2 %408 }
  0xc5   : > { %v1813_v16 = vsel %vm761_vm2, %v758_v7, %v409_v30  ;;  %v389_v40 = vpop.permute.xlu1 %388  ;;  %v387_v51 = vpop.permute.xlu0 %386  ;;  %v751_v7 = vsel %vm744_vm3, %v1521_v28, %v306_v62  ;;  %v753_v62 = vsel %vm744_vm3, %v1509_v24, %v1733_v18 }
  0xc6   : > { %v765_v45 = vsel %vm761_vm2, %v748_v53, %v389_v40  ;;  %v1817_v26 = vsel %vm761_vm2, %v747_v8, %v387_v51 }
  0xca   : > { %659 = vrot.lane.b32.xlu2 %v1606_v60, %s1351_s27  ;;  %v750_v60 = vsel %vm744_vm3, %v1457_v1, %v1728_v17  ;;  %v1847_v17 = vsel %vm252_vm0, %v481_v27, %v482_v61 }
  0xcb   : > { %613 = vrot.lane.b32.xlu1 %v1744_v32, %s1352_s28  ;;  %605 = vrot.lane.b32.xlu0 %v1586_v52, %s1352_s28  ;;  %v1842_v32 = vsel %vm341_vm1, %v534_v2, %v535_v5  ;;  %v754_v2 = vsel %vm744_vm3, %v1512_v25, %v312_v38  ;;  %v757_v38 = vsel %vm744_vm3, %v1586_v52, %v318_v44 }
  0xcc   : > { %v433_v14 = vpop.permute.xlu2 %432  ;;  %v759_v52 = vsel %vm744_vm3, %v1574_v48, %v1749_v12 }
  0xcd   : > { %v1835_v30 = vsel %vm778_vm4, %v762_v35, %v433_v14  ;;  %v395_v8 = vpop.permute.xlu1 %394  ;;  %v393_v53 = vpop.permute.xlu0 %392 }
  0xce   : > { %v768_v40 = vsel %vm761_vm2, %v751_v7, %v395_v8  ;;  %v767_v51 = vsel %vm761_vm2, %v750_v60, %v393_v53 }
  0xd2   : > { %720 = vrot.lane.b32.xlu2 %v1842_v32, %s1353_s29 }
  0xd3   : > { %712 = vrot.lane.b32.xlu1 %v1697_v4, %s1353_s29  ;;  %667 = vrot.lane.b32.xlu0 %v1847_v17, %s1351_s27 }
  0xd4   : > { %v439_v35 = vpop.permute.xlu2 %438 }
  0xd5   : > { %v1861_v14 = vsel %vm778_vm4, %v765_v45, %v439_v35  ;;  %v401_v27 = vpop.permute.xlu1 %400  ;;  %v399_v60 = vpop.permute.xlu0 %398  ;;  %v756_v45 = vsel %vm744_vm3, %v1543_v37, %v1738_v19  ;;  %v760_v19 = vsel %vm744_vm3, %v1577_v49, %v1797_v9 }
  0xd6   : > { %v771_v7 = vsel %vm761_vm2, %v754_v2, %v401_v27  ;;  %v770_v8 = vsel %vm761_vm2, %v753_v62, %v399_v60 }
  0xda   : > { %512 = vrot.lane.b32.xlu2 %v1624_v10, %s1349_s21 }
  0xdb   : > { %547 = vrot.lane.b32.xlu1 %v1658_v41, %s1350_s24  ;;  %539 = vrot.lane.b32.xlu0 %v1642_v29, %s1350_s24 }
  0xdc   : > { %v445_v18 = vpop.permute.xlu2 %444 }
  0xdd   : > { %v1877_v53 = vsel %vm778_vm4, %v768_v40, %v445_v18  ;;  %v407_v35 = vpop.permute.xlu1 %406  ;;  %v405_v62 = vpop.permute.xlu0 %404 }
  0xde   : > { %v774_v2 = vsel %vm761_vm2, %v757_v38, %v407_v35  ;;  %v773_v27 = vsel %vm761_vm2, %v756_v45, %v405_v62  ;;  %v224_v35 = vld [vmem:[%s1451_s9 + $0xd0] sm:$0x3] }
  0xe2   : > { %557 = vrot.lane.b32.xlu2 %v1700_v6, %s1350_s24 }
  0xe3   : > { %597 = vrot.lane.b32.xlu1 %v1509_v24, %s1352_s28  ;;  %589 = vrot.lane.b32.xlu0 %v1454_v0, %s1352_s28 }
  0xe4   : > { %v451_v29 = vpop.permute.xlu2 %450 }
  0xe5   : > { %v1894_v44 = vsel %vm778_vm4, %v771_v7, %v451_v29  ;;  %v413_v40 = vpop.permute.xlu1 %412  ;;  %v411_v60 = vpop.permute.xlu0 %410 }
  0xe6   : > { %v777_v24 = vsel %vm761_vm2, %v760_v19, %v413_v40  ;;  %v776_v18 = vsel %vm761_vm2, %v759_v52, %v411_v60 }
  0xea   : > { %651 = vrot.lane.b32.xlu2 %v1534_v34, %s1351_s27 }
  0xeb   : > { %643 = vrot.lane.b32.xlu1 %v1481_v13, %s1351_s27  ;;  %565 = vrot.lane.b32.xlu0 %v1712_v11, %s1350_s24  ;;  %v484_v13 = vrot.slane %v224_v35, 1 }
  0xec   : > { %v457_v0 = vpop.permute.xlu2 %456 }
  0xed   : > { %v1905_v12 = vsel %vm778_vm4, %v774_v2, %v457_v0  ;;  %v437_v9 = vpop.permute.xlu1 %436  ;;  %v435_v7 = vpop.permute.xlu0 %434  ;;  %v1927_v52 = vsel %vm252_vm0, %v482_v61, %v484_v13  ;;  %v225_v13 = vld [vmem:[%s1451_s9 + $0xd8] sm:$0xff] }
  0xee   : > { %v781_v45 = vsel %vm778_vm4, %v1817_v26, %v437_v9  ;;  %v780_v38 = vsel %vm778_vm4, %v1760_v57, %v435_v7 }
  0xf2   : > { %696 = vrot.lane.b32.xlu2 %v1636_v20, %s1353_s29 }
  0xf3   : > { %615 = vrot.lane.b32.xlu1 %v1741_v31, %s1352_s28  ;;  %607 = vrot.lane.b32.xlu0 %v1580_v50, %s1352_s28 }
  0xf4   : > { %v463_v34 = vpop.permute.xlu2 %462 }
  0xf5   : > { %v1919_v62 = vsel %vm778_vm4, %v777_v24, %v463_v34  ;;  %v443_v2 = vpop.permute.xlu1 %442  ;;  %v441_v26 = vpop.permute.xlu0 %440  ;;  %v2021_v34 = vld [vmem:[%s1451_s9 + $0xe0] sm:$0xff] }
  0xf6   : > { %v784_v29 = vsel %vm778_vm4, %v767_v51, %v443_v2  ;;  %v783_v57 = vsel %vm778_vm4, %v1771_v63, %v441_v26  ;;  %v537_v51 = vrot.slane %v224_v35, 2  ;;  %v638_v2 = vrot.slane %v225_v13, 1 }
  0xfa   : > { %669 = vrot.lane.b32.xlu2 %v1927_v52, %s1351_s27 }
  0xfb   : > { %661 = vrot.lane.b32.xlu1 %v1603_v59, %s1351_s27  ;;  %704 = vrot.lane.b32.xlu0 %v1681_v56, %s1353_s29  ;;  %v1948_v59 = vsel %vm341_vm1, %v535_v5, %v537_v51  ;;  %v880_v51 = vld [vmem:[%s2314_s1] sm:$0xff] }
  0xfc   : > { %v491_v50 = vpop.permute.xlu2 %490 }
  0xfd   : > { %v1936_v19 = vsel %vm795_vm5, %v781_v45, %v491_v50  ;;  %v449_v63 = vpop.permute.xlu1 %448  ;;  %v447_v40 = vpop.permute.xlu0 %446 }
  0xfe   : > { %v1939_v61 = vsel %vm778_vm4, %v770_v8, %v449_v63  ;;  %v1943_v60 = vsel %vm778_vm4, %v1782_v43, %v447_v40 }
 0x102   : > { %541 = vrot.lane.b32.xlu2 %v1639_v23, %s1350_s24 }
 0x103   : > { %722 = vrot.lane.b32.xlu1 %v1948_v59, %s1353_s29  ;;  %714 = vrot.lane.b32.xlu0 %v1694_v3, %s1353_s29 }
 0x104   : > { %v497_v8 = vpop.permute.xlu2 %496 }
 0x105   : > { %v1957_v24 = vsel %vm795_vm5, %v784_v29, %v497_v8  ;;  %v455_v43 = vpop.permute.xlu1 %454  ;;  %v453_v0 = vpop.permute.xlu0 %452  ;;  %v639_v29 = vrot.slane %v2021_v34, 1 }
 0x106   : > { %v790_v31 = vsel %vm778_vm4, %v773_v27, %v455_v43  ;;  %v1962_v5 = vsel %vm778_vm4, %v1795_v22, %v453_v0  ;;  %v692_v43 = vrot.slane %v2021_v34, 2 }
 0x107   : > { %v640_v8 = vsel %vm252_vm0, %v638_v2, %v639_v29 }
 0x10a   : > { %591 = vrot.lane.b32.xlu2 %v1457_v1, %s1352_s28 }
 0x10b   : > { %514 = vrot.lane.b32.xlu1 %v1847_v17, %s1349_s21  ;;  %549 = vrot.lane.b32.xlu0 %v1655_v33, %s1350_s24 }
 0x10c   : > { %v1970_v23 = vpop.permute.xlu2 %502 }
 0x10d   : > { %v461_v9 = vpop.permute.xlu1 %460  ;;  %v459_v7 = vpop.permute.xlu0 %458 }
 0x10e   : > { %v1973_v45 = vsel %vm778_vm4, %v776_v18, %v461_v9  ;;  %v1977_v22 = vsel %vm778_vm4, %v1813_v16, %v459_v7 }
 0x112   : > { %567 = vrot.lane.b32.xlu2 %v1842_v32, %s1350_s24 }
 0x113   : > { %559 = vrot.lane.b32.xlu1 %v1697_v4, %s1350_s24  ;;  %599 = vrot.lane.b32.xlu0 %v1512_v25, %s1352_s28 }
 0x114   : > { %v509_v1 = vpop.permute.xlu2 %508 }
 0x115   : > { %v1986_v17 = vsel %vm795_vm5, %v790_v31, %v509_v1  ;;  %v489_v27 = vpop.permute.xlu1 %488  ;;  %v487_v18 = vpop.permute.xlu0 %486 }
 0x116   : > { %v1989_v35 = vsel %vm795_vm5, %v780_v38, %v489_v27  ;;  %v1993_v16 = vsel %vm795_vm5, %v1835_v30, %v487_v18  ;;  %v884_v30 = vld [vmem:[%s2314_s1 + $0x20] sm:$0xf] }
 0x117   : > { %1154 = vmatpush.msk.msra.mxu2 %vm938_vm6, %v884_v30  ;;  %1155 = vmatpush.msk.msra.mxu3 %vm938_vm6, %v884_v30 }
 0x118   : > { %1128 = vmatpush.msk.msra.mxu0 %vm938_vm6, %v884_v30  ;;  %1153 = vmatpush.msk.msra.mxu1 %vm938_vm6, %v884_v30 }
 0x11a   : > { %609 = vrot.lane.b32.xlu2 %v1574_v48, %s1352_s28 }
 0x11b   : > { %653 = vrot.lane.b32.xlu1 %v1571_v47, %s1351_s27  ;;  %645 = vrot.lane.b32.xlu0 %v1502_v21, %s1351_s27  ;;  %v883_v21 = vld [vmem:[%s2314_s1 + $0x18] sm:$0xff]  ;;  %v882_v47 = vld [vmem:[%s2314_s1 + $0x10] sm:$0xff] }
 0x11c   : > { %v2001_v25 = vpop.permute.xlu2 %563  ;;  %1157 = vmatpush.msra.mxu2 %v883_v21  ;;  %1158 = vmatpush.msra.mxu3 %v883_v21 }
 0x11d   : > { %v495_v4 = vpop.permute.xlu1 %494  ;;  %v493_v32 = vpop.permute.xlu0 %492  ;;  %954 = vmatpush.msra.mxu0 %v883_v21  ;;  %1156 = vmatpush.msra.mxu1 %v883_v21 }
 0x11e   : > { %v2007_v38 = vsel %vm795_vm5, %v783_v57, %v495_v4  ;;  %v2011_v48 = vsel %vm795_vm5, %v1861_v14, %v493_v32  ;;  %1160 = vmatpush.msra.mxu2 %v882_v47  ;;  %v881_v14 = vld [vmem:[%s2314_s1 + $0x8] sm:$0xff]  ;;  %1161 = vmatpush.msra.mxu3 %v882_v47 }
 0x11f   : > { %955 = vmatpush.msra.mxu0 %v882_v47  ;;  %1159 = vmatpush.msra.mxu1 %v882_v47  ;;  %v227_v47 = vld [vmem:[%s1451_s9 + $0xe8] sm:$0x3]  ;;  %s185_s9 = sand.u32 1, %s1320_s13  }
 0x120   : > { %1163 = vmatpush.msra.mxu2 %v881_v14  ;;  %1164 = vmatpush.msra.mxu3 %v881_v14 }
 0x121   : > { %956 = vmatpush.msra.mxu0 %v881_v14  ;;  %1162 = vmatpush.msra.mxu1 %v881_v14  ;;  %v641_v14 = vrot.slane %v227_v47, 1 }
 0x122   : > { %706 = vrot.lane.b32.xlu2 %v1678_v55, %s1353_s29  ;;  %1166 = vmatpush.msra.mxu2 %v880_v51 }
 0x123   : > { %698 = vrot.lane.b32.xlu1 %v1661_v42, %s1353_s29  ;;  %617 = vrot.lane.b32.xlu0 %v225_v13, %s1352_s28 }
 0x124   : > { %v660_v26 = vpop.permute.xlu2 %659  ;;  %1167 = vmatpush.msra.mxu3 %v880_v51  ;;  %957 = vmatpush.msra.mxu0 %v880_v51 }
 0x125   : > { %v501_v57 = vpop.permute.xlu1 %500  ;;  %v499_v50 = vpop.permute.xlu0 %498  ;;  %1165 = vmatpush.msra.mxu1 %v880_v51 }
 0x126   : > { %v2037_v63 = vsel %vm795_vm5, %v1943_v60, %v501_v57  ;;  %v2041_v40 = vsel %vm795_vm5, %v1877_v53, %v499_v50  ;;  %v691_v53 = vrot.slane %v225_v13, 2  ;;  %v694_v13 = vrot.slane %v227_v47, 2 }
 0x127   : > { %v642_v57 = vsel %vm252_vm0, %v639_v29, %v641_v14 }
 0x12a   : > { %716 = vrot.lane.b32.xlu2 %v1715_v15, %s1353_s29  ;;  %v693_v15 = vsel %vm341_vm1, %v691_v53, %v692_v43 }
 0x12b   : > { %671 = vrot.lane.b32.xlu1 %v640_v8, %s1351_s27  ;;  %663 = vrot.lane.b32.xlu0 %v1600_v58, %s1351_s27  ;;  %v2325_v8 = vld [vmem:[#allocation5_spill] sm:$0xff] }
 0x12c   : > { %v721_v60 = vpop.permute.xlu2 %720 }
 0x12d   : > { %v507_v0 = vpop.permute.xlu1 %506  ;;  %v505_v31 = vpop.permute.xlu0 %504 }
 0x12e   : > { %v2054_v9 = vsel %vm795_vm5, %v1962_v5, %v507_v0  ;;  %v2058_v7 = vsel %vm795_vm5, %v1894_v44, %v505_v31  ;;  %v2327_v0 = vld [vmem:[#allocation6_spill] sm:$0xff] }
 0x132   : > { %551 = vrot.lane.b32.xlu2 %v1681_v56, %s1350_s24 }
 0x133   : > { %543 = vrot.lane.b32.xlu1 %v1636_v20, %s1350_s24  ;;  %724 = vrot.lane.b32.xlu0 %v693_v15, %s1353_s29  ;;  %v804_v20 = vsel %vm795_vm5, %v1939_v61, %v1970_v23 }
 0x134   : > { %v2066_v58 = vpop.permute.xlu2 %512 }
 0x135   : > { %v556_v1 = vpop.permute.xlu1 %555  ;;  %v511_v27 = vpop.permute.xlu0 %510 }
 0x136   : > { %v821_v18 = vsel %vm812_vm7, %v804_v20, %v556_v1 }
 0x13a   : > { %601 = vrot.lane.b32.xlu2 %v1549_v39, %s1352_s28  ;;  %v808_v39 = vsel %vm795_vm5, %v1905_v12, %v511_v27 }
 0x13b   : > { %593 = vrot.lane.b32.xlu1 %v1521_v28, %s1352_s28  ;;  %516 = vrot.lane.b32.xlu0 %v1927_v52, %s1349_s21  ;;  %v825_v52 = vsel %vm812_vm7, %v808_v39, %v2001_v25  ;;  %s1125_s21 = sshll.u32 %s185_s9, 7 }
 0x13c   : > { %v2074_v44 = vpop.permute.xlu2 %557 }
 0x13d   : > { %v614_v56 = vpop.permute.xlu1 %613  ;;  %v606_v5 = vpop.permute.xlu0 %605 }
 0x13e   : > { %v838_v28 = vsel %vm829_vm8, %v821_v18, %v606_v5  ;;  %v842_v12 = vsel %vm829_vm8, %v825_v52, %v614_v56 }
 0x13f   : > { %v855_v32 = vsel %vm846_vm9, %v838_v28, %v660_v26  ;;  %v695_v26 = vsel %vm341_vm1, %v692_v43, %v694_v13  ;;  %v2326_v43 = vld [vmem:[#allocation7_spill] sm:$0xff] }
 0x142   : > { %647 = vrot.lane.b32.xlu2 %v1540_v36, %s1351_s27 }
 0x143   : > { %569 = vrot.lane.b32.xlu1 %v1948_v59, %s1350_s24  ;;  %561 = vrot.lane.b32.xlu0 %v1694_v3, %s1350_s24 }
 0x144   : > { %v652_v61 = vpop.permute.xlu2 %651 }
 0x145   : > { %v713_v23 = vpop.permute.xlu1 %712  ;;  %v668_v4 = vpop.permute.xlu0 %667 }
 0x146   : > { %v859_v36 = vsel %vm846_vm9, %v842_v12, %v668_v4  ;;  %v872_v59 = vsel %vm863_vm10, %v855_v32, %v713_v23 }
 0x147   : > { %1137 = vmatmul.msk.f32.vlgmr.msra.gmra.mxu2 %vm889_vm11, %v872_v59  ;;  %v876_v3 = vsel %vm863_vm10, %v859_v36, %v721_v60 }
 0x148   : > { %1141 = vmatmul.msk.f32.vlgmr.msra.gmra.mxu3 %vm889_vm11, %v876_v3 }
 0x14a   : > { %619 = vrot.lane.b32.xlu2 %v2021_v34, %s1352_s28 }
 0x14b   : > { %611 = vrot.lane.b32.xlu1 %v1577_v49, %s1352_s28  ;;  %655 = vrot.lane.b32.xlu0 %v1568_v46, %s1351_s27 }
 0x14c   : > { %v697_v21 = vpop.permute.xlu2 %696 }
 0x14d   : > { %v548_v25 = vpop.permute.xlu1 %547  ;;  %v540_v30 = vpop.permute.xlu0 %539 }
 0x14e   : > { %v817_v53 = vsel %vm812_vm7, %v2007_v38, %v548_v25  ;;  %v809_v38 = vsel %vm795_vm5, %v1977_v22, %v2066_v58 }
 0x152   : > { %665 = vrot.lane.b32.xlu2 %v1624_v10, %s1351_s27  ;;  %v813_v10 = vsel %vm812_vm7, %v1993_v16, %v540_v30 }
 0x153   : > { %708 = vrot.lane.b32.xlu1 %v1675_v54, %s1353_s29  ;;  %700 = vrot.lane.b32.xlu0 %v1658_v41, %s1353_s29 }
 0x154   : > { %v670_v46 = vpop.permute.xlu2 %669 }
 0x155   : > { %v598_v2 = vpop.permute.xlu1 %597  ;;  %v590_v49 = vpop.permute.xlu0 %589 }
 0x156   : > { %v830_v41 = vsel %vm829_vm8, %v813_v10, %v590_v49  ;;  %v834_v60 = vsel %vm829_vm8, %v817_v53, %v598_v2 }
 0x15a   : > { %726 = vrot.lane.b32.xlu2 %v695_v26, %s1353_s29 }
 0x15b   : > { %718 = vrot.lane.b32.xlu1 %v1712_v11, %s1353_s29  ;;  %673 = vrot.lane.b32.xlu0 %v642_v57, %s1351_s27 }
 0x15c   : > { %v542_v29 = vpop.permute.xlu2 %541 }
 0x15d   : > { %v644_v54 = vpop.permute.xlu1 %643  ;;  %v566_v50 = vpop.permute.xlu0 %565  ;;  %v814_v25 = vsel %vm812_vm7, %v1989_v35, %v542_v29 }
 0x15e   : > { %v847_v51 = vsel %vm846_vm9, %v830_v41, %v644_v54  ;;  %v826_v27 = vsel %vm812_vm7, %v809_v38, %v566_v50 }
 0x15f   : > { %v864_v34 = vsel %vm863_vm10, %v847_v51, %v697_v21 }
 0x160   : > { %1129 = vmatmul.msk.f32.vlgmr.msra.gmra.mxu0 %vm889_vm11, %v864_v34 }
 0x162   : > { %595 = vrot.lane.b32.xlu2 %v2325_v8, %s1352_s28 }
 0x163   : > { %553 = vrot.lane.b32.xlu1 %v1678_v55, %s1350_s24  ;;  %545 = vrot.lane.b32.xlu0 %v1661_v42, %s1350_s24  ;;  %v851_v42 = vsel %vm846_vm9, %v834_v60, %v652_v61 }
 0x164   : > { %v592_v55 = vpop.permute.xlu2 %591 }
 0x165   : > { %v616_v11 = vpop.permute.xlu1 %615  ;;  %v608_v16 = vpop.permute.xlu0 %607  ;;  %v831_v30 = vsel %vm829_vm8, %v814_v25, %v592_v55 }
 0x166   : > { %v843_v56 = vsel %vm829_vm8, %v826_v27, %v616_v11 }
 0x167   : > { %v860_v58 = vsel %vm846_vm9, %v843_v56, %v670_v46 }
 0x16a   : > { %657 = vrot.lane.b32.xlu2 %v2326_v43, %s1351_s27 }
 0x16b   : > { %649 = vrot.lane.b32.xlu1 %v2327_v0, %s1351_s27  ;;  %603 = vrot.lane.b32.xlu0 %v1543_v37, %s1352_s28  ;;  %v822_v37 = vsel %vm812_vm7, %v2058_v7, %v2074_v44  ;;  %s2217_s28 = scalar_lea.vmem [#allocation2], %s1125_s21 }
 0x16c   : > { %v839_v5 = vsel %vm829_vm8, %v822_v37, %v608_v16  ;;  %v568_v39 = vpop.permute.xlu2 %567  ;;  %s1039_s6 = sshll.u32 %s2217_s28, 4  ;;  %s1040_s6 = int_to_ptr.vmem [resolvable:$true] %s1039_s6 }
 0x16d   : > { %v662_v31 = vpop.permute.xlu1 %661  ;;  %v705_v15 = vpop.permute.xlu0 %704 }
 0x16e   : > { %v868_v1 = vsel %vm863_vm10, %v851_v42, %v705_v15  ;;  %v856_v20 = vsel %vm846_vm9, %v839_v5, %v662_v31 }
 0x16f   : > { %1133 = vmatmul.msk.f32.vlgmr.msra.gmra.mxu1 %vm889_vm11, %v868_v1 }
 0x173   : > { %710 = vrot.lane.b32.xlu1 %v1700_v6, %s1353_s29  ;;  %702 = vrot.lane.b32.xlu0 %v1655_v33, %s1353_s29  ;;  %s1152_s29 = sshll.u32 %s1328_s15, 4  ;;  %s1024_s15 = scalar_lea.sflag [#allocation3], %s185_s9 }
 0x174   : > { %v610_v33 = vpop.permute.xlu2 %609  ;;  %s1036_s8 = sadd.s32 %s1152_s29, %s1148_s7  ;;  %s1270_s7 = scalar_lea.hbm %s2316_s3, 512 }
 0x175   : > { %v723_v18 = vpop.permute.xlu1 %722  ;;  %v715_v22 = vpop.permute.xlu0 %714  ;;  %s1149_s10 = sshll.u32 %s1036_s8, 3 }
 0x176   : > { %v873_v28 = vsel %vm863_vm10, %v856_v20, %v715_v22  ;;  %v877_v52 = vsel %vm863_vm10, %v860_v58, %v723_v18  ;;  %s1038_s5 = scalar_lea.hbm %s2316_s3, %s1149_s10 }
 0x177   : > { %1138 = vmatmul.msk.f32.gmra.mxu2 %vm889_vm11, %v873_v28  ;;  %1142 = vmatmul.msk.f32.gmra.mxu3 %vm889_vm11, %v877_v52  ;;  %s1041_s21 = sshll.u32 %s1038_s5, 4  ;;  %s1042_s21 = int_to_ptr.hbm [resolvable:$true] %s1041_s21 }
 0x178   : > { %s1264_s16 = sshra.s32 %s1042_s21, 4  ;;  %s1265_s16 = int_to_ptr.hbm [resolvable:$true] %s1264_s16 }
 0x179   : > { %s1266_s24 = scalar_lea.hbm %s1265_s16, 128  ;;  %p1271_p2 = scmp.lt.s32.totalorder %s1265_s16, %s2316_s3 }
 0x17a   : > { %p1267_p13 = scmp.ne.s32.totalorder %s1265_s16, %s1266_s24  ;;  %p1272_p4 = scmp.lt.s32.totalorder %s1270_s7, %s1266_s24 }
 0x17c   : > { %v707_v12 = vpop.permute.xlu2 %706  ;;  %p1268_p0 = pnand %p1267_p13, %p1426_p3  ;;  %p1273_p5 = por %p1272_p4, %p1271_p2 }
 0x17d   : > { %v515_v6 = vpop.permute.xlu1 %514  ;;  %v550_v7 = vpop.permute.xlu0 %549 }
 0x17e   : > { %v818_v23 = vsel %vm812_vm7, %v1957_v24, %v550_v7  ;;  %v810_v41 = vsel %vm795_vm5, %v1973_v45, %v515_v6  ;;  %p1269_p1 = pneg %p1268_p0 }
 0x17f   : > { %v827_v54 = vsel %vm812_vm7, %v810_v41, %v568_v39 }
 0x180   : > { %p1274_p6 = pnand %p1273_p5, %p1269_p1 }
 0x184   : > { %v717_v21 = vpop.permute.xlu2 %716 }
 0x185   : > { %v560_v44 = vpop.permute.xlu1 %559  ;;  %v600_v61 = vpop.permute.xlu0 %599 }
 0x186   : > { %v835_v4 = vsel %vm829_vm8, %v818_v23, %v600_v61  ;;  %v823_v2 = vsel %vm812_vm7, %v2054_v9, %v560_v44 }
 0x187   : > { %v840_v26 = vsel %vm829_vm8, %v823_v2, %v610_v33 }
 0x18c   : > { %v552_v57 = vpop.permute.xlu2 %551 }
 0x18d   : > { %v654_v32 = vpop.permute.xlu1 %653  ;;  %v646_v36 = vpop.permute.xlu0 %645  ;;  %v819_v42 = vsel %vm812_vm7, %v2041_v40, %v552_v57 }
 0x18e   : > { %v852_v59 = vsel %vm846_vm9, %v835_v4, %v654_v32  ;;  %v848_v47 = vsel %vm846_vm9, %v831_v30, %v646_v36 }
 0x18f   : > { %v869_v3 = vsel %vm863_vm10, %v852_v59, %v707_v12 }
 0x190   : > { %1134 = vmatmul.msk.f32.gmra.mxu1 %vm889_vm11, %v869_v3 }
 0x194   : > { %v602_v8 = vpop.permute.xlu2 %601 }
 0x195   : > { %v699_v13 = vpop.permute.xlu1 %698  ;;  %v618_v24 = vpop.permute.xlu0 %617  ;;  %v836_v1 = vsel %vm829_vm8, %v819_v42, %v602_v8 }
 0x196   : > { %v865_v14 = vsel %vm863_vm10, %v848_v47, %v699_v13  ;;  %v844_v50 = vsel %vm829_vm8, %v827_v54, %v618_v24 }
 0x197   : > { %1130 = vmatmul.msk.f32.gmra.mxu0 %vm889_vm11, %v865_v14 }
 0x19c   : > { %v648_v53 = vpop.permute.xlu2 %647 }
 0x19d   : > { %v672_v49 = vpop.permute.xlu1 %671  ;;  %v664_v46 = vpop.permute.xlu0 %663 }
 0x19e   : > { %v857_v35 = vsel %vm846_vm9, %v840_v26, %v664_v46  ;;  %v861_v9 = vsel %vm846_vm9, %v844_v50, %v672_v49 }
 0x19f   : > { %v874_v10 = vsel %vm863_vm10, %v857_v35, %v717_v21 }
 0x1a0   : > { %1139 = vmatmul.msk.f32.gmra.mxu2 %vm889_vm11, %v874_v10 }
 0x1a4   : > { %v620_v43 = vpop.permute.xlu2 %619 }
 0x1a5   : > { %v544_v51 = vpop.permute.xlu1 %543  ;;  %v725_v34 = vpop.permute.xlu0 %724 }
 0x1a6   : > { %v878_v29 = vsel %vm863_vm10, %v861_v9, %v725_v34  ;;  %v815_v31 = vsel %vm812_vm7, %v1936_v19, %v544_v51  ;;  %v2205_v19 = vld [vmem:[%s2315_s2] ss:$0 sm:$0xff] }
 0x1a7   : > { %1143 = vmatmul.msk.f32.gmra.mxu3 %vm889_vm11, %v878_v29 }
 0x1ac   : > { %v666_v38 = vpop.permute.xlu2 %665 }
 0x1ad   : > { %v594_v11 = vpop.permute.xlu1 %593  ;;  %v517_v16 = vpop.permute.xlu0 %516 }
 0x1ae   : > { %v832_v15 = vsel %vm829_vm8, %v815_v31, %v594_v11  ;;  %v811_v40 = vsel %vm795_vm5, %v1919_v62, %v517_v16 }
 0x1af   : > { %v849_v27 = vsel %vm846_vm9, %v832_v15, %v648_v53 }
 0x1b4   : > { %v727_v33 = vpop.permute.xlu2 %726 }
 0x1b5   : > { %v570_v45 = vpop.permute.xlu1 %569  ;;  %v562_v60 = vpop.permute.xlu0 %561 }
 0x1b6   : > { %v824_v22 = vsel %vm812_vm7, %v1986_v17, %v562_v60  ;;  %v828_v58 = vsel %vm812_vm7, %v811_v40, %v570_v45 }
 0x1b7   : > { %v845_v44 = vsel %vm829_vm8, %v828_v58, %v620_v43 }
 0x1bc   : > { %v596_v59 = vpop.permute.xlu2 %595 }
 0x1bd   : > { %v612_v0 = vpop.permute.xlu1 %611  ;;  %v656_v55 = vpop.permute.xlu0 %655 }
 0x1be   : > { %v853_v56 = vsel %vm846_vm9, %v836_v1, %v656_v55  ;;  %v841_v39 = vsel %vm829_vm8, %v824_v22, %v612_v0 }
 0x1bf   : > { %v858_v61 = vsel %vm846_vm9, %v841_v39, %v666_v38 }
 0x1c4   : > { %v658_v14 = vpop.permute.xlu2 %657 }
 0x1c5   : > { %v709_v37 = vpop.permute.xlu1 %708  ;;  %v701_v5 = vpop.permute.xlu0 %700 }
 0x1c6   : > { %v866_v20 = vsel %vm863_vm10, %v849_v27, %v701_v5  ;;  %v870_v18 = vsel %vm863_vm10, %v853_v56, %v709_v37 }
 0x1c7   : > { %1131 = vmatmul.msk.f32.gmra.mxu0 %vm889_vm11, %v866_v20  ;;  %1135 = vmatmul.msk.f32.gmra.mxu1 %vm889_vm11, %v870_v18 }
 0x1ca   : > { %v983_v28 = vpop.f32.mrf.mxu2 }
 0x1cb   : > { %v984_v52 = vadd.f32 %v2205_v19, %v983_v28  ;;  %v995_v6 = vpop.f32.mrf.mxu3 }
 0x1cc   : > { %v996_v7 = vadd.f32 %v2205_v19, %v995_v6 }
 0x1cd   : > { %1015 = vst [vmem:[%s2217_s28 + $0x40] sm:$0xff] %v984_v52  ;;  %v719_v62 = vpop.permute.xlu1 %718  ;;  %v674_v17 = vpop.permute.xlu0 %673 }
 0x1ce   : > { %1019 = vst [vmem:[%s2217_s28 + $0x60] sm:$0xff] %v996_v7  ;;  %v862_v12 = vsel %vm846_vm9, %v845_v44, %v674_v17  ;;  %v875_v23 = vsel %vm863_vm10, %v858_v61, %v719_v62 }
 0x1cf   : > { %1140 = vmatmul.msk.f32.gmra.mxu2 %vm889_vm11, %v875_v23  ;;  %v879_v4 = vsel %vm863_vm10, %v862_v12, %v727_v33 }
 0x1d0   : > { %1144 = vmatmul.msk.f32.gmra.mxu3 %vm889_vm11, %v879_v4 }
 0x1d5   : > { %v554_v32 = vpop.permute.xlu1 %553  ;;  %v546_v36 = vpop.permute.xlu0 %545 }
 0x1d6   : > { %v820_v47 = vsel %vm812_vm7, %v2037_v63, %v554_v32  ;;  %v816_v13 = vsel %vm812_vm7, %v2011_v48, %v546_v36 }
 0x1d7   : > { %v833_v2 = vsel %vm829_vm8, %v816_v13, %v596_v59 }
 0x1dd   : > { %v650_v3 = vpop.permute.xlu1 %649  ;;  %v959_v25 = vpop.f32.mrf.mxu0 }
 0x1de   : > { %v960_v30 = vadd.f32 %v2205_v19, %v959_v25  ;;  %v604_v21 = vpop.permute.xlu0 %603  ;;  %v850_v46 = vsel %vm846_vm9, %v833_v2, %v650_v3 }
 0x1df   : > { %v837_v24 = vsel %vm829_vm8, %v820_v47, %v604_v21 }
 0x1e0   : > { %1007 = vst [vmem:[%s2217_s28] sm:$0xff] %v960_v30  ;;  %v854_v49 = vsel %vm846_vm9, %v837_v24, %v658_v14 }
 0x1e5   : > { %v711_v26 = vpop.permute.xlu1 %710 }
 0x1e6   : > { %v703_v57 = vpop.permute.xlu0 %702  ;;  %v871_v35 = vsel %vm863_vm10, %v854_v49, %v711_v26 }
 0x1e7   : > { %v867_v63 = vsel %vm863_vm10, %v850_v46, %v703_v57  ;;  %1136 = vmatmul.msk.f32.gmra.mxu1 %vm889_vm11, %v871_v35 }
 0x1e8   : > { %1132 = vmatmul.msk.f32.gmra.mxu0 %vm889_vm11, %v867_v63 }
 0x1ec   : > { %v971_v48 = vpop.f32.mrf.mxu1 }
 0x1ed   : > { %v972_v10 = vadd.f32 %v2205_v19, %v971_v48 }
 0x1ef   : > { %1011 = vst [vmem:[%s2217_s28 + $0x20] sm:$0xff] %v972_v10 }
 0x1fa   : > { %v986_v41 = vpop.f32.mrf.mxu2  ;;  %v998_v54 = vpop.f32.mrf.mxu3 }
 0x1fb   : > { %v987_v50 = vadd.f32 %v2205_v19, %v986_v41  ;;  %v999_v9 = vadd.f32 %v2205_v19, %v998_v54 }
 0x1fd   : > { %1016 = vst [vmem:[%s2217_s28 + $0x48] sm:$0xff] %v987_v50 }
 0x1fe   : > { %1020 = vst [vmem:[%s2217_s28 + $0x68] sm:$0xff] %v999_v9 }
 0x20d   : > { %v974_v51 = vpop.f32.mrf.mxu1 }
 0x20e   : > { %v975_v34 = vadd.f32 %v2205_v19, %v974_v51 }
 0x210   : > { %1012 = vst [vmem:[%s2217_s28 + $0x28] sm:$0xff] %v975_v34 }
 0x214   : > { %v962_v29 = vpop.f32.mrf.mxu0 }
 0x215   : > { %v963_v8 = vadd.f32 %v2205_v19, %v962_v29 }
 0x217   : > { %1008 = vst [vmem:[%s2217_s28 + $0x8] sm:$0xff] %v963_v8 }
 0x223   : > { %v989_v11 = vpop.f32.mrf.mxu2 }
 0x224   : > { %v990_v16 = vadd.f32 %v2205_v19, %v989_v11 }
 0x226   : > { %1017 = vst [vmem:[%s2217_s28 + $0x50] sm:$0xff] %v990_v16 }
 0x22a   : > { %v1001_v53 = vpop.f32.mrf.mxu3 }
 0x22b   : > { %v1002_v45 = vadd.f32 %v2205_v19, %v1001_v53 }
 0x22d   : > { %1021 = vst [vmem:[%s2217_s28 + $0x70] sm:$0xff] %v1002_v45 }
 0x244   : > { %v965_v60 = vpop.f32.mrf.mxu0  ;;  %v977_v43 = vpop.f32.mrf.mxu1 }
 0x245   : > { %v966_v0 = vadd.f32 %v2205_v19, %v965_v60  ;;  %v978_v55 = vadd.f32 %v2205_v19, %v977_v43 }
 0x247   : > { %1009 = vst [vmem:[%s2217_s28 + $0x10] sm:$0xff] %v966_v0 }
 0x248   : > { %1013 = vst [vmem:[%s2217_s28 + $0x30] sm:$0xff] %v978_v55 }
 0x252   : > { %v992_v31 = vpop.f32.mrf.mxu2 }
 0x253   : > { %v993_v15 = vadd.f32 %v2205_v19, %v992_v31  ;;  %v1004_v42 = vpop.f32.mrf.mxu3 }
 0x254   : > { %v1005_v1 = vadd.f32 %v2205_v19, %v1004_v42 }
 0x255   : > { %1018 = vst [vmem:[%s2217_s28 + $0x58] sm:$0xff] %v993_v15 }
 0x256   : > { %1022 = vst [vmem:[%s2217_s28 + $0x78] sm:$0xff] %v1005_v1 }
 0x264   : > { %v980_v38 = vpop.f32.mrf.mxu1 }
 0x265   : > { %v968_v27 = vpop.f32.mrf.mxu0  ;;  %v981_v56 = vadd.f32 %v2205_v19, %v980_v38 }
 0x266   : > { %v969_v37 = vadd.f32 %v2205_v19, %v968_v27 }
 0x267   : > { %1014 = vst [vmem:[%s2217_s28 + $0x38] sm:$0xff] %v981_v56 }
 0x268   : > { %1010 = vst [vmem:[%s2217_s28 + $0x18] sm:$0xff] %v969_v37 }
 0x269   : > { %1277 = shalt.err (!%p1274_p6)
}
 0x26a   : > { %s1354_s9 = smov 128  }
 0x26b   : > { %1169 = dma.vmem_to_hbm [thread:$0]  (%p1426_p3), %s1040_s6, 2048, %s1042_s21, %s1024_s15, %s1354_s9, %s1354_s9, %s1347_s11  }
 0x26c PF: > { %p1175_p7 = scmp.ge.s32.totalorder %s1344_s19, 2  ;;  %s1056_s28 = sand.u32 1, %s1316_s12  }
 0x26d   : > { %s1057_s20 = scalar_lea.sflag [#allocation3], %s1056_s28 }
 0x26e   : > { %p1172_p9 = pnand %p1175_p7, %p1435_p8 }
 0x270   : > { %p1173_p10 = pneg %p1172_p9 }
 0x272   : > { %1311 = dma.done.wait (%p1173_p10), %s1057_s20, 2048  }
 0x273   : > { %1313 = vsyncadd (%p1173_p10), %s1057_s20, 4294965248  ;;  %s16_s19 = sadd.s32 1, %s1344_s19   ;;  %s2328_s12 = smov %s1320_s13 }
 0x274   : > { %p13_p11 = scmp.ge.s32.totalorder %s16_s19, 6   ;;  %s2329_s13 = smov %s1324_s14 }
 0x275   : > { %s2330_s14 = smov %s1444_s30  ;;  %s2331_s15 = smov %s1336_s17 }
 0x276   : > { %s2332_s16 = smov %s1340_s18  ;;  %s2333_s17 = smov %s2336_s22 }
 0x277   : > { %s2334_s18 = smov %s2340_s23  ;;  %15 = sbr.rel (!%p13_p11) target bundleno = 5 (0x5), region = 67 }
 0x27c   :  { %1063 = vsyncpa [#allocation3], 1 }
 0x27d   :  { %1065 = vsyncpa [#allocation3 + $0x1], 1 }

</bundles_post_ra>
